<compile_context>
chip_gen: v7x
topology: tpu7x:2x2x1
jax: 0.10.0
libtpu: 0.0.40
codegen_flags: <defaults>
</compile_context>

<pallas_src>
import functools

import jax
import jax.numpy as jnp
from jax import lax
from jax.experimental import pallas as pl
from jax.experimental.pallas import tpu as pltpu

DIN = 4                               # Linear(4, 2)
DOUT = 2
LANES = 128
SAMPLES_PER_ROW = LANES // DIN        # 32 samples per packed input row
OUT_LANES = SAMPLES_PER_ROW * DOUT    # 64 output lanes per packed row
_COMPACT_SHIFTS = (2, 4, 8, 16, 32)   # bit decomposition of the 2*g lane shift


def _round_up(n, m):
    return ((n + m - 1) // m) * m


def _make_kernel(block_rows, chunk_rows):
    """Build the kernel for one (block_rows, 128) packed-input block."""
    assert block_rows % chunk_rows == 0
    n_chunks = block_rows // chunk_rows

    def kernel(x_ref, w_ref, b_ref, o_ref):
        # x_ref: (block_rows, 128) VMEM f32; lane 4g+k <-> (sample g, feature k)
        # w_ref: (2, 4) SMEM f32 (PyTorch layout); b_ref: (2,) SMEM f32
        # o_ref: (block_rows, 64) VMEM f32; lane 2g+j <-> (sample g, output j)
        w = [[w_ref[j, k] for k in range(DIN)] for j in range(DOUT)]
        b = [b_ref[j] for j in range(DOUT)]

        # Lane-index masks, hoisted: built once per grid step, ~1 vreg each.
        lane = lax.broadcasted_iota(jnp.int32, (1, LANES), 1)
        base_mask = (lane % DIN) == 0                   # lanes 4g (one / sample)
        # Repack step v moves every element whose remaining left-shift has bit
        # v set; at that step non-movers sit at lanes = [0, v), mover sources
        # at [2v, 3v) and mover destinations at [v, 2v) (all mod 4v), so the
        # destination mask below never clobbers live data.
        dest_masks = [
            jnp.logical_and((lane % (4 * v)) >= v, (lane % (4 * v)) < 2 * v)
            for v in _COMPACT_SHIFTS
        ]

        def body(c, carry):
            r0 = pl.multiple_of(c * chunk_rows, chunk_rows)
            xs = x_ref[pl.ds(r0, chunk_rows), :]        # (chunk, 128)

            # z_j[l] = sum_k w[j,k] * xs[l+k] + b[j]; at base lanes l = 4g this
            # is the j-th logit of sample g.  Shifted copies are static lane
            # rotations (XLU); the FMAs run on the VPU.
            z0 = w[0][0] * xs + b[0]
            z1 = w[1][0] * xs + b[1]
            for k in range(1, DIN):
                xk = jnp.roll(xs, -k, axis=-1)          # xk[l] = xs[l + k]
                z0 = z0 + w[0][k] * xk
                z1 = z1 + w[1][k] * xk

            # Pack [z0(g), z1(g)] at lanes (4g, 4g+1); lanes 4g+2/3 are junk.
            y = jnp.where(base_mask, z0, jnp.roll(z1, 1, axis=-1))

            # Repack to the dense output layout: lane 4g+e -> lane 2g+e, i.e.
            # a left shift by 2g, applied bit by bit (2, 4, ..., 32).
            for v, dm in zip(_COMPACT_SHIFTS, dest_masks):
                y = jnp.where(dm, jnp.roll(y, -v, axis=-1), y)

            # Sigmoid on the packed logits (EUP tanh; numerically == sigmoid).
            out = 0.5 * jnp.tanh(0.5 * y[:, :OUT_LANES]) + 0.5
            o_ref[pl.ds(r0, chunk_rows), :] = out.astype(o_ref.dtype)
            return carry

        lax.fori_loop(0, n_chunks, body, 0)

    return kernel


def _choose_block_rows(n_rows, max_rows=2048):
    """Packed-row tile: multiple of 8 sublanes, >= 2 grid steps when possible
    (lets v7x split the batch across both TensorCores), capped so the
    double-buffered VMEM footprint (~2 KiB/row) stays ~4 MiB -- well under the
    v5e 16 MiB scoped-VMEM default and the v7x 64 MiB physical ceiling."""
    if n_rows <= 16:
        return n_rows                       # single full-extent block
    return min(max_rows, _round_up(pl.cdiv(n_rows, 2), 8))


@functools.partial(jax.jit, static_argnames=("block_rows",))
def classifier1_forward(x, weight, bias, *, block_rows=None):
    """sigmoid(x @ weight.T + bias); x: (B, 4), weight: (2, 4), bias: (2,)."""
    B, din = x.shape
    assert din == DIN and weight.shape == (DOUT, DIN) and bias.shape == (DOUT,)

    # Pack 32 samples per 128-lane row.  For B % 32 == 0 this reshape (and the
    # inverse on the output) is a free row-major bitcast -- no HBM pass.
    Bp = _round_up(B, SAMPLES_PER_ROW)
    x_pad = jnp.pad(x, ((0, Bp - B), (0, 0))) if Bp != B else x
    n_rows = Bp // SAMPLES_PER_ROW
    x_packed = x_pad.reshape(n_rows, LANES)

    tb = _choose_block_rows(n_rows) if block_rows is None else int(block_rows)
    tb = max(1, min(tb, n_rows))
    if tb != n_rows and tb % 8 != 0:        # sublane-align unless full extent
        tb = min(_round_up(tb, 8), n_rows)
    chunk = 32 if tb % 32 == 0 else (8 if tb % 8 == 0 else tb)

    grid = (pl.cdiv(n_rows, tb),)
    out_packed = pl.pallas_call(
        _make_kernel(tb, chunk),
        out_shape=jax.ShapeDtypeStruct((n_rows, OUT_LANES), jnp.float32),
        grid_spec=pltpu.PrefetchScalarGridSpec(
            num_scalar_prefetch=0,
            grid=grid,
            in_specs=[
                pl.BlockSpec((tb, LANES), lambda i: (i, 0)),
                pl.BlockSpec(memory_space=pltpu.MemorySpace.SMEM),  # weight
                pl.BlockSpec(memory_space=pltpu.MemorySpace.SMEM),  # bias
            ],
            out_specs=pl.BlockSpec((tb, OUT_LANES), lambda i: (i, 0)),
        ),
        compiler_params=pltpu.CompilerParams(
            dimension_semantics=("parallel",),   # independent batch slices
        ),
    )(x_packed, weight, bias)

    out = out_packed.reshape(Bp, DOUT)      # free reshape back to (B, 2)
    return out[:B] if Bp != B else out


if __name__ == "__main__":
    key = jax.random.PRNGKey(0)
    kx, kw, kb = jax.random.split(key, 3)

    bound = 1.0 / (DIN ** 0.5)              # ~ PyTorch nn.Linear default init
    weight = jax.random.uniform(kw, (DOUT, DIN), jnp.float32, -bound, bound)
    bias = jax.random.uniform(kb, (DOUT,), jnp.float32, -bound, bound)

    # B=1024: 32-aligned zero-copy path, 2 grid steps, 2 in-kernel chunks.
    # B=300 : ragged path (pad to 320 samples, single full-extent block).
    for B in (1024, 300):
        xb = jax.random.normal(jax.random.fold_in(kx, B), (B, DIN), jnp.float32)
        out = jax.block_until_ready(classifier1_forward(xb, weight, bias))
        ref = jax.nn.sigmoid(xb @ weight.T + bias)
        assert out.shape == (B, DOUT)
        assert jnp.allclose(out, ref, atol=1e-5, rtol=1e-5), f"mismatch at B={B}"

    print("KERNEL_OK")
</pallas_src>

<mosaic_0001>
module attributes {stable_mosaic.version = 11 : i64} {
  func.func @kernel(%arg0: i32, %arg1: memref<16x128xf32, #tpu.memory_space<vmem>>, %arg2: memref<2x4xf32, #tpu.memory_space<smem>>, %arg3: memref<2xf32, #tpu.memory_space<smem>>, %arg4: memref<16x64xf32, #tpu.memory_space<vmem>>) attributes {dimension_semantics = [#tpu.dimension_semantics<parallel>], iteration_bounds = array<i64: 2>, scalar_prefetch = 0 : i64, scratch_operands = 0 : i64, tpu.core_type = #tpu.core_type<tc>, window_params = [{transform_indices = @transform_0, window_bounds = array<i64: 16, 128>}, {transform_indices = @transform_1, window_bounds = array<i64: 2, 4>}, {transform_indices = @transform_2, window_bounds = array<i64: 2>}, {transform_indices = @transform_3, window_bounds = array<i64: 16, 64>}]} {
    %c0 = arith.constant 0 : index
    %c0_0 = arith.constant 0 : index
    %0 = memref.load %arg2[%c0, %c0_0] : memref<2x4xf32, #tpu.memory_space<smem>>
    %c0_1 = arith.constant 0 : index
    %c1 = arith.constant 1 : index
    %1 = memref.load %arg2[%c0_1, %c1] : memref<2x4xf32, #tpu.memory_space<smem>>
    %c0_2 = arith.constant 0 : index
    %c2 = arith.constant 2 : index
    %2 = memref.load %arg2[%c0_2, %c2] : memref<2x4xf32, #tpu.memory_space<smem>>
    %c0_3 = arith.constant 0 : index
    %c3 = arith.constant 3 : index
    %3 = memref.load %arg2[%c0_3, %c3] : memref<2x4xf32, #tpu.memory_space<smem>>
    %c1_4 = arith.constant 1 : index
    %c0_5 = arith.constant 0 : index
    %4 = memref.load %arg2[%c1_4, %c0_5] : memref<2x4xf32, #tpu.memory_space<smem>>
    %c1_6 = arith.constant 1 : index
    %c1_7 = arith.constant 1 : index
    %5 = memref.load %arg2[%c1_6, %c1_7] : memref<2x4xf32, #tpu.memory_space<smem>>
    %c1_8 = arith.constant 1 : index
    %c2_9 = arith.constant 2 : index
    %6 = memref.load %arg2[%c1_8, %c2_9] : memref<2x4xf32, #tpu.memory_space<smem>>
    %c1_10 = arith.constant 1 : index
    %c3_11 = arith.constant 3 : index
    %7 = memref.load %arg2[%c1_10, %c3_11] : memref<2x4xf32, #tpu.memory_space<smem>>
    %c0_12 = arith.constant 0 : index
    %8 = memref.load %arg3[%c0_12] : memref<2xf32, #tpu.memory_space<smem>>
    %c1_13 = arith.constant 1 : index
    %9 = memref.load %arg3[%c1_13] : memref<2xf32, #tpu.memory_space<smem>>
    %10 = tpu.iota {dimensions = array<i32: 1>} : vector<1x128xi32>
    %c4_i32 = arith.constant 4 : i32
    %c0_i32 = arith.constant 0 : i32
    %11 = arith.cmpi eq, %c4_i32, %c0_i32 : i32
    %c1_i32 = arith.constant 1 : i32
    %12 = arith.select %11, %c1_i32, %c4_i32 : i32
    %13 = vector.broadcast %12 : i32 to vector<1x128xi32>
    %14 = arith.remsi %10, %13 : vector<1x128xi32>
    %c0_i32_14 = arith.constant 0 : i32
    %15 = vector.broadcast %c0_i32_14 : i32 to vector<1x128xi32>
    %16 = arith.cmpi ne, %14, %15 : vector<1x128xi32>
    %c0_i32_15 = arith.constant 0 : i32
    %17 = vector.broadcast %c0_i32_15 : i32 to vector<1x128xi32>
    %18 = arith.cmpi slt, %14, %17 : vector<1x128xi32>
    %c0_i32_16 = arith.constant 0 : i32
    %19 = arith.cmpi slt, %12, %c0_i32_16 : i32
    %20 = vector.broadcast %19 : i1 to vector<1x128xi1>
    %21 = vector.broadcast %20 : vector<1x128xi1> to vector<1x128xi1>
    %22 = arith.xori %18, %21 : vector<1x128xi1>
    %23 = arith.andi %22, %16 : vector<1x128xi1>
    %24 = vector.broadcast %12 : i32 to vector<1x128xi32>
    %25 = arith.addi %14, %24 : vector<1x128xi32>
    %26 = arith.select %23, %25, %14 : vector<1x128xi1>, vector<1x128xi32>
    %c0_i32_17 = arith.constant 0 : i32
    %27 = vector.broadcast %c0_i32_17 : i32 to vector<1x128xi32>
    %28 = arith.cmpi eq, %26, %27 : vector<1x128xi32>
    %c8_i32 = arith.constant 8 : i32
    %c0_i32_18 = arith.constant 0 : i32
    %29 = arith.cmpi eq, %c8_i32, %c0_i32_18 : i32
    %c1_i32_19 = arith.constant 1 : i32
    %30 = arith.select %29, %c1_i32_19, %c8_i32 : i32
    %31 = vector.broadcast %30 : i32 to vector<1x128xi32>
    %32 = arith.remsi %10, %31 : vector<1x128xi32>
    %c0_i32_20 = arith.constant 0 : i32
    %33 = vector.broadcast %c0_i32_20 : i32 to vector<1x128xi32>
    %34 = arith.cmpi ne, %32, %33 : vector<1x128xi32>
    %c0_i32_21 = arith.constant 0 : i32
    %35 = vector.broadcast %c0_i32_21 : i32 to vector<1x128xi32>
    %36 = arith.cmpi slt, %32, %35 : vector<1x128xi32>
    %c0_i32_22 = arith.constant 0 : i32
    %37 = arith.cmpi slt, %30, %c0_i32_22 : i32
    %38 = vector.broadcast %37 : i1 to vector<1x128xi1>
    %39 = vector.broadcast %38 : vector<1x128xi1> to vector<1x128xi1>
    %40 = arith.xori %36, %39 : vector<1x128xi1>
    %41 = arith.andi %40, %34 : vector<1x128xi1>
    %42 = vector.broadcast %30 : i32 to vector<1x128xi32>
    %43 = arith.addi %32, %42 : vector<1x128xi32>
    %44 = arith.select %41, %43, %32 : vector<1x128xi1>, vector<1x128xi32>
    %c2_i32 = arith.constant 2 : i32
    %45 = vector.broadcast %c2_i32 : i32 to vector<1x128xi32>
    %46 = arith.cmpi sge, %44, %45 : vector<1x128xi32>
    %c8_i32_23 = arith.constant 8 : i32
    %c0_i32_24 = arith.constant 0 : i32
    %47 = arith.cmpi eq, %c8_i32_23, %c0_i32_24 : i32
    %c1_i32_25 = arith.constant 1 : i32
    %48 = arith.select %47, %c1_i32_25, %c8_i32_23 : i32
    %49 = vector.broadcast %48 : i32 to vector<1x128xi32>
    %50 = arith.remsi %10, %49 : vector<1x128xi32>
    %c0_i32_26 = arith.constant 0 : i32
    %51 = vector.broadcast %c0_i32_26 : i32 to vector<1x128xi32>
    %52 = arith.cmpi ne, %50, %51 : vector<1x128xi32>
    %c0_i32_27 = arith.constant 0 : i32
    %53 = vector.broadcast %c0_i32_27 : i32 to vector<1x128xi32>
    %54 = arith.cmpi slt, %50, %53 : vector<1x128xi32>
    %c0_i32_28 = arith.constant 0 : i32
    %55 = arith.cmpi slt, %48, %c0_i32_28 : i32
    %56 = vector.broadcast %55 : i1 to vector<1x128xi1>
    %57 = vector.broadcast %56 : vector<1x128xi1> to vector<1x128xi1>
    %58 = arith.xori %54, %57 : vector<1x128xi1>
    %59 = arith.andi %58, %52 : vector<1x128xi1>
    %60 = vector.broadcast %48 : i32 to vector<1x128xi32>
    %61 = arith.addi %50, %60 : vector<1x128xi32>
    %62 = arith.select %59, %61, %50 : vector<1x128xi1>, vector<1x128xi32>
    %c4_i32_29 = arith.constant 4 : i32
    %63 = vector.broadcast %c4_i32_29 : i32 to vector<1x128xi32>
    %64 = arith.cmpi slt, %62, %63 : vector<1x128xi32>
    %65 = arith.andi %46, %64 : vector<1x128xi1>
    %c16_i32 = arith.constant 16 : i32
    %c0_i32_30 = arith.constant 0 : i32
    %66 = arith.cmpi eq, %c16_i32, %c0_i32_30 : i32
    %c1_i32_31 = arith.constant 1 : i32
    %67 = arith.select %66, %c1_i32_31, %c16_i32 : i32
    %68 = vector.broadcast %67 : i32 to vector<1x128xi32>
    %69 = arith.remsi %10, %68 : vector<1x128xi32>
    %c0_i32_32 = arith.constant 0 : i32
    %70 = vector.broadcast %c0_i32_32 : i32 to vector<1x128xi32>
    %71 = arith.cmpi ne, %69, %70 : vector<1x128xi32>
    %c0_i32_33 = arith.constant 0 : i32
    %72 = vector.broadcast %c0_i32_33 : i32 to vector<1x128xi32>
    %73 = arith.cmpi slt, %69, %72 : vector<1x128xi32>
    %c0_i32_34 = arith.constant 0 : i32
    %74 = arith.cmpi slt, %67, %c0_i32_34 : i32
    %75 = vector.broadcast %74 : i1 to vector<1x128xi1>
    %76 = vector.broadcast %75 : vector<1x128xi1> to vector<1x128xi1>
    %77 = arith.xori %73, %76 : vector<1x128xi1>
    %78 = arith.andi %77, %71 : vector<1x128xi1>
    %79 = vector.broadcast %67 : i32 to vector<1x128xi32>
    %80 = arith.addi %69, %79 : vector<1x128xi32>
    %81 = arith.select %78, %80, %69 : vector<1x128xi1>, vector<1x128xi32>
    %c4_i32_35 = arith.constant 4 : i32
    %82 = vector.broadcast %c4_i32_35 : i32 to vector<1x128xi32>
    %83 = arith.cmpi sge, %81, %82 : vector<1x128xi32>
    %c16_i32_36 = arith.constant 16 : i32
    %c0_i32_37 = arith.constant 0 : i32
    %84 = arith.cmpi eq, %c16_i32_36, %c0_i32_37 : i32
    %c1_i32_38 = arith.constant 1 : i32
    %85 = arith.select %84, %c1_i32_38, %c16_i32_36 : i32
    %86 = vector.broadcast %85 : i32 to vector<1x128xi32>
    %87 = arith.remsi %10, %86 : vector<1x128xi32>
    %c0_i32_39 = arith.constant 0 : i32
    %88 = vector.broadcast %c0_i32_39 : i32 to vector<1x128xi32>
    %89 = arith.cmpi ne, %87, %88 : vector<1x128xi32>
    %c0_i32_40 = arith.constant 0 : i32
    %90 = vector.broadcast %c0_i32_40 : i32 to vector<1x128xi32>
    %91 = arith.cmpi slt, %87, %90 : vector<1x128xi32>
    %c0_i32_41 = arith.constant 0 : i32
    %92 = arith.cmpi slt, %85, %c0_i32_41 : i32
    %93 = vector.broadcast %92 : i1 to vector<1x128xi1>
    %94 = vector.broadcast %93 : vector<1x128xi1> to vector<1x128xi1>
    %95 = arith.xori %91, %94 : vector<1x128xi1>
    %96 = arith.andi %95, %89 : vector<1x128xi1>
    %97 = vector.broadcast %85 : i32 to vector<1x128xi32>
    %98 = arith.addi %87, %97 : vector<1x128xi32>
    %99 = arith.select %96, %98, %87 : vector<1x128xi1>, vector<1x128xi32>
    %c8_i32_42 = arith.constant 8 : i32
    %100 = vector.broadcast %c8_i32_42 : i32 to vector<1x128xi32>
    %101 = arith.cmpi slt, %99, %100 : vector<1x128xi32>
    %102 = arith.andi %83, %101 : vector<1x128xi1>
    %c32_i32 = arith.constant 32 : i32
    %c0_i32_43 = arith.constant 0 : i32
    %103 = arith.cmpi eq, %c32_i32, %c0_i32_43 : i32
    %c1_i32_44 = arith.constant 1 : i32
    %104 = arith.select %103, %c1_i32_44, %c32_i32 : i32
    %105 = vector.broadcast %104 : i32 to vector<1x128xi32>
    %106 = arith.remsi %10, %105 : vector<1x128xi32>
    %c0_i32_45 = arith.constant 0 : i32
    %107 = vector.broadcast %c0_i32_45 : i32 to vector<1x128xi32>
    %108 = arith.cmpi ne, %106, %107 : vector<1x128xi32>
    %c0_i32_46 = arith.constant 0 : i32
    %109 = vector.broadcast %c0_i32_46 : i32 to vector<1x128xi32>
    %110 = arith.cmpi slt, %106, %109 : vector<1x128xi32>
    %c0_i32_47 = arith.constant 0 : i32
    %111 = arith.cmpi slt, %104, %c0_i32_47 : i32
    %112 = vector.broadcast %111 : i1 to vector<1x128xi1>
    %113 = vector.broadcast %112 : vector<1x128xi1> to vector<1x128xi1>
    %114 = arith.xori %110, %113 : vector<1x128xi1>
    %115 = arith.andi %114, %108 : vector<1x128xi1>
    %116 = vector.broadcast %104 : i32 to vector<1x128xi32>
    %117 = arith.addi %106, %116 : vector<1x128xi32>
    %118 = arith.select %115, %117, %106 : vector<1x128xi1>, vector<1x128xi32>
    %c8_i32_48 = arith.constant 8 : i32
    %119 = vector.broadcast %c8_i32_48 : i32 to vector<1x128xi32>
    %120 = arith.cmpi sge, %118, %119 : vector<1x128xi32>
    %c32_i32_49 = arith.constant 32 : i32
    %c0_i32_50 = arith.constant 0 : i32
    %121 = arith.cmpi eq, %c32_i32_49, %c0_i32_50 : i32
    %c1_i32_51 = arith.constant 1 : i32
    %122 = arith.select %121, %c1_i32_51, %c32_i32_49 : i32
    %123 = vector.broadcast %122 : i32 to vector<1x128xi32>
    %124 = arith.remsi %10, %123 : vector<1x128xi32>
    %c0_i32_52 = arith.constant 0 : i32
    %125 = vector.broadcast %c0_i32_52 : i32 to vector<1x128xi32>
    %126 = arith.cmpi ne, %124, %125 : vector<1x128xi32>
    %c0_i32_53 = arith.constant 0 : i32
    %127 = vector.broadcast %c0_i32_53 : i32 to vector<1x128xi32>
    %128 = arith.cmpi slt, %124, %127 : vector<1x128xi32>
    %c0_i32_54 = arith.constant 0 : i32
    %129 = arith.cmpi slt, %122, %c0_i32_54 : i32
    %130 = vector.broadcast %129 : i1 to vector<1x128xi1>
    %131 = vector.broadcast %130 : vector<1x128xi1> to vector<1x128xi1>
    %132 = arith.xori %128, %131 : vector<1x128xi1>
    %133 = arith.andi %132, %126 : vector<1x128xi1>
    %134 = vector.broadcast %122 : i32 to vector<1x128xi32>
    %135 = arith.addi %124, %134 : vector<1x128xi32>
    %136 = arith.select %133, %135, %124 : vector<1x128xi1>, vector<1x128xi32>
    %c16_i32_55 = arith.constant 16 : i32
    %137 = vector.broadcast %c16_i32_55 : i32 to vector<1x128xi32>
    %138 = arith.cmpi slt, %136, %137 : vector<1x128xi32>
    %139 = arith.andi %120, %138 : vector<1x128xi1>
    %c64_i32 = arith.constant 64 : i32
    %c0_i32_56 = arith.constant 0 : i32
    %140 = arith.cmpi eq, %c64_i32, %c0_i32_56 : i32
    %c1_i32_57 = arith.constant 1 : i32
    %141 = arith.select %140, %c1_i32_57, %c64_i32 : i32
    %142 = vector.broadcast %141 : i32 to vector<1x128xi32>
    %143 = arith.remsi %10, %142 : vector<1x128xi32>
    %c0_i32_58 = arith.constant 0 : i32
    %144 = vector.broadcast %c0_i32_58 : i32 to vector<1x128xi32>
    %145 = arith.cmpi ne, %143, %144 : vector<1x128xi32>
    %c0_i32_59 = arith.constant 0 : i32
    %146 = vector.broadcast %c0_i32_59 : i32 to vector<1x128xi32>
    %147 = arith.cmpi slt, %143, %146 : vector<1x128xi32>
    %c0_i32_60 = arith.constant 0 : i32
    %148 = arith.cmpi slt, %141, %c0_i32_60 : i32
    %149 = vector.broadcast %148 : i1 to vector<1x128xi1>
    %150 = vector.broadcast %149 : vector<1x128xi1> to vector<1x128xi1>
    %151 = arith.xori %147, %150 : vector<1x128xi1>
    %152 = arith.andi %151, %145 : vector<1x128xi1>
    %153 = vector.broadcast %141 : i32 to vector<1x128xi32>
    %154 = arith.addi %143, %153 : vector<1x128xi32>
    %155 = arith.select %152, %154, %143 : vector<1x128xi1>, vector<1x128xi32>
    %c16_i32_61 = arith.constant 16 : i32
    %156 = vector.broadcast %c16_i32_61 : i32 to vector<1x128xi32>
    %157 = arith.cmpi sge, %155, %156 : vector<1x128xi32>
    %c64_i32_62 = arith.constant 64 : i32
    %c0_i32_63 = arith.constant 0 : i32
    %158 = arith.cmpi eq, %c64_i32_62, %c0_i32_63 : i32
    %c1_i32_64 = arith.constant 1 : i32
    %159 = arith.select %158, %c1_i32_64, %c64_i32_62 : i32
    %160 = vector.broadcast %159 : i32 to vector<1x128xi32>
    %161 = arith.remsi %10, %160 : vector<1x128xi32>
    %c0_i32_65 = arith.constant 0 : i32
    %162 = vector.broadcast %c0_i32_65 : i32 to vector<1x128xi32>
    %163 = arith.cmpi ne, %161, %162 : vector<1x128xi32>
    %c0_i32_66 = arith.constant 0 : i32
    %164 = vector.broadcast %c0_i32_66 : i32 to vector<1x128xi32>
    %165 = arith.cmpi slt, %161, %164 : vector<1x128xi32>
    %c0_i32_67 = arith.constant 0 : i32
    %166 = arith.cmpi slt, %159, %c0_i32_67 : i32
    %167 = vector.broadcast %166 : i1 to vector<1x128xi1>
    %168 = vector.broadcast %167 : vector<1x128xi1> to vector<1x128xi1>
    %169 = arith.xori %165, %168 : vector<1x128xi1>
    %170 = arith.andi %169, %163 : vector<1x128xi1>
    %171 = vector.broadcast %159 : i32 to vector<1x128xi32>
    %172 = arith.addi %161, %171 : vector<1x128xi32>
    %173 = arith.select %170, %172, %161 : vector<1x128xi1>, vector<1x128xi32>
    %c32_i32_68 = arith.constant 32 : i32
    %174 = vector.broadcast %c32_i32_68 : i32 to vector<1x128xi32>
    %175 = arith.cmpi slt, %173, %174 : vector<1x128xi32>
    %176 = arith.andi %157, %175 : vector<1x128xi1>
    %c128_i32 = arith.constant 128 : i32
    %c0_i32_69 = arith.constant 0 : i32
    %177 = arith.cmpi eq, %c128_i32, %c0_i32_69 : i32
    %c1_i32_70 = arith.constant 1 : i32
    %178 = arith.select %177, %c1_i32_70, %c128_i32 : i32
    %179 = vector.broadcast %178 : i32 to vector<1x128xi32>
    %180 = arith.remsi %10, %179 : vector<1x128xi32>
    %c0_i32_71 = arith.constant 0 : i32
    %181 = vector.broadcast %c0_i32_71 : i32 to vector<1x128xi32>
    %182 = arith.cmpi ne, %180, %181 : vector<1x128xi32>
    %c0_i32_72 = arith.constant 0 : i32
    %183 = vector.broadcast %c0_i32_72 : i32 to vector<1x128xi32>
    %184 = arith.cmpi slt, %180, %183 : vector<1x128xi32>
    %c0_i32_73 = arith.constant 0 : i32
    %185 = arith.cmpi slt, %178, %c0_i32_73 : i32
    %186 = vector.broadcast %185 : i1 to vector<1x128xi1>
    %187 = vector.broadcast %186 : vector<1x128xi1> to vector<1x128xi1>
    %188 = arith.xori %184, %187 : vector<1x128xi1>
    %189 = arith.andi %188, %182 : vector<1x128xi1>
    %190 = vector.broadcast %178 : i32 to vector<1x128xi32>
    %191 = arith.addi %180, %190 : vector<1x128xi32>
    %192 = arith.select %189, %191, %180 : vector<1x128xi1>, vector<1x128xi32>
    %c32_i32_74 = arith.constant 32 : i32
    %193 = vector.broadcast %c32_i32_74 : i32 to vector<1x128xi32>
    %194 = arith.cmpi sge, %192, %193 : vector<1x128xi32>
    %c128_i32_75 = arith.constant 128 : i32
    %c0_i32_76 = arith.constant 0 : i32
    %195 = arith.cmpi eq, %c128_i32_75, %c0_i32_76 : i32
    %c1_i32_77 = arith.constant 1 : i32
    %196 = arith.select %195, %c1_i32_77, %c128_i32_75 : i32
    %197 = vector.broadcast %196 : i32 to vector<1x128xi32>
    %198 = arith.remsi %10, %197 : vector<1x128xi32>
    %c0_i32_78 = arith.constant 0 : i32
    %199 = vector.broadcast %c0_i32_78 : i32 to vector<1x128xi32>
    %200 = arith.cmpi ne, %198, %199 : vector<1x128xi32>
    %c0_i32_79 = arith.constant 0 : i32
    %201 = vector.broadcast %c0_i32_79 : i32 to vector<1x128xi32>
    %202 = arith.cmpi slt, %198, %201 : vector<1x128xi32>
    %c0_i32_80 = arith.constant 0 : i32
    %203 = arith.cmpi slt, %196, %c0_i32_80 : i32
    %204 = vector.broadcast %203 : i1 to vector<1x128xi1>
    %205 = vector.broadcast %204 : vector<1x128xi1> to vector<1x128xi1>
    %206 = arith.xori %202, %205 : vector<1x128xi1>
    %207 = arith.andi %206, %200 : vector<1x128xi1>
    %208 = vector.broadcast %196 : i32 to vector<1x128xi32>
    %209 = arith.addi %198, %208 : vector<1x128xi32>
    %210 = arith.select %207, %209, %198 : vector<1x128xi1>, vector<1x128xi32>
    %c64_i32_81 = arith.constant 64 : i32
    %211 = vector.broadcast %c64_i32_81 : i32 to vector<1x128xi32>
    %212 = arith.cmpi slt, %210, %211 : vector<1x128xi32>
    %213 = arith.andi %194, %212 : vector<1x128xi1>
    %c0_i32_82 = arith.constant 0 : i32
    %c2_i32_83 = arith.constant 2 : i32
    %214 = arith.addi %c0_i32_82, %c2_i32_83 : i32
    %c1_i32_84 = arith.constant 1 : i32
    scf.for %arg5 = %c0_i32_82 to %214 step %c1_i32_84  : i32 {
      %c8_i32_86 = arith.constant 8 : i32
      %215 = arith.muli %arg5, %c8_i32_86 : i32
      %216 = tpu.assume_multiple %215, 8 : i32
      %217 = arith.index_cast %216 : i32 to index
      %c0_87 = arith.constant 0 : index
      %218 = vector.load %arg1[%217, %c0_87] : memref<16x128xf32, #tpu.memory_space<vmem>>, vector<8x128xf32>
      %219 = vector.broadcast %0 : f32 to vector<8x128xf32>
      %220 = arith.mulf %219, %218 : vector<8x128xf32>
      %221 = vector.broadcast %8 : f32 to vector<8x128xf32>
      %222 = arith.addf %220, %221 : vector<8x128xf32>
      %223 = vector.broadcast %4 : f32 to vector<8x128xf32>
      %224 = arith.mulf %223, %218 : vector<8x128xf32>
      %225 = vector.broadcast %9 : f32 to vector<8x128xf32>
      %226 = arith.addf %224, %225 : vector<8x128xf32>
      %227 = vector.extract_strided_slice %218 {offsets = [0, 1], sizes = [8, 127], strides = [1, 1]} : vector<8x128xf32> to vector<8x127xf32>
      %228 = vector.extract_strided_slice %218 {offsets = [0, 0], sizes = [8, 1], strides = [1, 1]} : vector<8x128xf32> to vector<8x1xf32>
      %229 = tpu.concatenate %227, %228 in 1 : vector<8x127xf32>, vector<8x1xf32> -> vector<8x128xf32>
      %230 = vector.broadcast %1 : f32 to vector<8x128xf32>
      %231 = arith.mulf %230, %229 : vector<8x128xf32>
      %232 = arith.addf %222, %231 : vector<8x128xf32>
      %233 = vector.broadcast %5 : f32 to vector<8x128xf32>
      %234 = arith.mulf %233, %229 : vector<8x128xf32>
      %235 = arith.addf %226, %234 : vector<8x128xf32>
      %236 = vector.extract_strided_slice %218 {offsets = [0, 2], sizes = [8, 126], strides = [1, 1]} : vector<8x128xf32> to vector<8x126xf32>
      %237 = vector.extract_strided_slice %218 {offsets = [0, 0], sizes = [8, 2], strides = [1, 1]} : vector<8x128xf32> to vector<8x2xf32>
      %238 = tpu.concatenate %236, %237 in 1 : vector<8x126xf32>, vector<8x2xf32> -> vector<8x128xf32>
      %239 = vector.broadcast %2 : f32 to vector<8x128xf32>
      %240 = arith.mulf %239, %238 : vector<8x128xf32>
      %241 = arith.addf %232, %240 : vector<8x128xf32>
      %242 = vector.broadcast %6 : f32 to vector<8x128xf32>
      %243 = arith.mulf %242, %238 : vector<8x128xf32>
      %244 = arith.addf %235, %243 : vector<8x128xf32>
      %245 = vector.extract_strided_slice %218 {offsets = [0, 3], sizes = [8, 125], strides = [1, 1]} : vector<8x128xf32> to vector<8x125xf32>
      %246 = vector.extract_strided_slice %218 {offsets = [0, 0], sizes = [8, 3], strides = [1, 1]} : vector<8x128xf32> to vector<8x3xf32>
      %247 = tpu.concatenate %245, %246 in 1 : vector<8x125xf32>, vector<8x3xf32> -> vector<8x128xf32>
      %248 = vector.broadcast %3 : f32 to vector<8x128xf32>
      %249 = arith.mulf %248, %247 : vector<8x128xf32>
      %250 = arith.addf %241, %249 : vector<8x128xf32>
      %251 = vector.broadcast %7 : f32 to vector<8x128xf32>
      %252 = arith.mulf %251, %247 : vector<8x128xf32>
      %253 = arith.addf %244, %252 : vector<8x128xf32>
      %254 = vector.extract_strided_slice %253 {offsets = [0, 127], sizes = [8, 1], strides = [1, 1]} : vector<8x128xf32> to vector<8x1xf32>
      %255 = vector.extract_strided_slice %253 {offsets = [0, 0], sizes = [8, 127], strides = [1, 1]} : vector<8x128xf32> to vector<8x127xf32>
      %256 = tpu.concatenate %254, %255 in 1 : vector<8x1xf32>, vector<8x127xf32> -> vector<8x128xf32>
      %257 = vector.shape_cast %28 : vector<1x128xi1> to vector<1x128xi1>
      %258 = vector.broadcast %257 : vector<1x128xi1> to vector<8x128xi1>
      %259 = arith.select %258, %250, %256 : vector<8x128xi1>, vector<8x128xf32>
      %260 = vector.extract_strided_slice %259 {offsets = [0, 2], sizes = [8, 126], strides = [1, 1]} : vector<8x128xf32> to vector<8x126xf32>
      %261 = vector.extract_strided_slice %259 {offsets = [0, 0], sizes = [8, 2], strides = [1, 1]} : vector<8x128xf32> to vector<8x2xf32>
      %262 = tpu.concatenate %260, %261 in 1 : vector<8x126xf32>, vector<8x2xf32> -> vector<8x128xf32>
      %263 = vector.shape_cast %65 : vector<1x128xi1> to vector<1x128xi1>
      %264 = vector.broadcast %263 : vector<1x128xi1> to vector<8x128xi1>
      %265 = arith.select %264, %262, %259 : vector<8x128xi1>, vector<8x128xf32>
      %266 = vector.extract_strided_slice %265 {offsets = [0, 4], sizes = [8, 124], strides = [1, 1]} : vector<8x128xf32> to vector<8x124xf32>
      %267 = vector.extract_strided_slice %265 {offsets = [0, 0], sizes = [8, 4], strides = [1, 1]} : vector<8x128xf32> to vector<8x4xf32>
      %268 = tpu.concatenate %266, %267 in 1 : vector<8x124xf32>, vector<8x4xf32> -> vector<8x128xf32>
      %269 = vector.shape_cast %102 : vector<1x128xi1> to vector<1x128xi1>
      %270 = vector.broadcast %269 : vector<1x128xi1> to vector<8x128xi1>
      %271 = arith.select %270, %268, %265 : vector<8x128xi1>, vector<8x128xf32>
      %272 = vector.extract_strided_slice %271 {offsets = [0, 8], sizes = [8, 120], strides = [1, 1]} : vector<8x128xf32> to vector<8x120xf32>
      %273 = vector.extract_strided_slice %271 {offsets = [0, 0], sizes = [8, 8], strides = [1, 1]} : vector<8x128xf32> to vector<8x8xf32>
      %274 = tpu.concatenate %272, %273 in 1 : vector<8x120xf32>, vector<8x8xf32> -> vector<8x128xf32>
      %275 = vector.shape_cast %139 : vector<1x128xi1> to vector<1x128xi1>
      %276 = vector.broadcast %275 : vector<1x128xi1> to vector<8x128xi1>
      %277 = arith.select %276, %274, %271 : vector<8x128xi1>, vector<8x128xf32>
      %278 = vector.extract_strided_slice %277 {offsets = [0, 16], sizes = [8, 112], strides = [1, 1]} : vector<8x128xf32> to vector<8x112xf32>
      %279 = vector.extract_strided_slice %277 {offsets = [0, 0], sizes = [8, 16], strides = [1, 1]} : vector<8x128xf32> to vector<8x16xf32>
      %280 = tpu.concatenate %278, %279 in 1 : vector<8x112xf32>, vector<8x16xf32> -> vector<8x128xf32>
      %281 = vector.shape_cast %176 : vector<1x128xi1> to vector<1x128xi1>
      %282 = vector.broadcast %281 : vector<1x128xi1> to vector<8x128xi1>
      %283 = arith.select %282, %280, %277 : vector<8x128xi1>, vector<8x128xf32>
      %284 = vector.extract_strided_slice %283 {offsets = [0, 32], sizes = [8, 96], strides = [1, 1]} : vector<8x128xf32> to vector<8x96xf32>
      %285 = vector.extract_strided_slice %283 {offsets = [0, 0], sizes = [8, 32], strides = [1, 1]} : vector<8x128xf32> to vector<8x32xf32>
      %286 = tpu.concatenate %284, %285 in 1 : vector<8x96xf32>, vector<8x32xf32> -> vector<8x128xf32>
      %287 = vector.shape_cast %213 : vector<1x128xi1> to vector<1x128xi1>
      %288 = vector.broadcast %287 : vector<1x128xi1> to vector<8x128xi1>
      %289 = arith.select %288, %286, %283 : vector<8x128xi1>, vector<8x128xf32>
      %290 = vector.extract_strided_slice %289 {offsets = [0, 0], sizes = [8, 64], strides = [1, 1]} : vector<8x128xf32> to vector<8x64xf32>
      %cst = arith.constant 5.000000e-01 : f32
      %291 = vector.broadcast %cst : f32 to vector<8x64xf32>
      %292 = arith.mulf %291, %290 : vector<8x64xf32>
      %293 = math.tanh %292 : vector<8x64xf32>
      %cst_88 = arith.constant 5.000000e-01 : f32
      %294 = vector.broadcast %cst_88 : f32 to vector<8x64xf32>
      %295 = arith.mulf %294, %293 : vector<8x64xf32>
      %cst_89 = arith.constant 5.000000e-01 : f32
      %296 = vector.broadcast %cst_89 : f32 to vector<8x64xf32>
      %297 = arith.addf %295, %296 : vector<8x64xf32>
      %298 = arith.index_cast %216 : i32 to index
      %c0_90 = arith.constant 0 : index
      %299 = vector.load %arg4[%298, %c0_90] : memref<16x64xf32, #tpu.memory_space<vmem>>, vector<8x64xf32>
      tpu.vector_store %arg4[%298, %c0_90], %297 {strides = array<i32>} : memref<16x64xf32, #tpu.memory_space<vmem>>, vector<8x64xf32>,
    }
    %c2_i32_85 = arith.constant 2 : i32
    return
  }
  func.func @transform_0(%arg0: i32) -> (i32, i32) {
    %c0_i32 = arith.constant 0 : i32
    %c0_i32_0 = arith.constant 0 : i32
    return %arg0, %c0_i32 : i32, i32
  }
  func.func @transform_1(%arg0: i32) -> (i32, i32) {
    %c0_i32 = arith.constant 0 : i32
    %c0_i32_0 = arith.constant 0 : i32
    %c0_i32_1 = arith.constant 0 : i32
    return %c0_i32, %c0_i32_0 : i32, i32
  }
  func.func @transform_2(%arg0: i32) -> i32 {
    %c0_i32 = arith.constant 0 : i32
    %c0_i32_0 = arith.constant 0 : i32
    return %c0_i32 : i32
  }
  func.func @transform_3(%arg0: i32) -> (i32, i32) {
    %c0_i32 = arith.constant 0 : i32
    %c0_i32_0 = arith.constant 0 : i32
    return %arg0, %c0_i32 : i32, i32
  }
}

</mosaic_0001>

<bundles_post_ra>
// kernel: classifier1_forward.1
= control target key start
LH: loop header
LB: loop body
LE: loop exit
PB: predicated region body
PF: predicated region fallthrough
CT: control target
= control target key end

     0   :  { %8 = vsyncpa [#allocation3], 0  ;;  %s828_s0 = inlined_call_operand.vmem [shape: f32[32,128], index: 0, kind: input, shape index: {}]   ;;  %s829_s1 = inlined_call_operand.vmem [shape: f32[2,4], index: 1, kind: input, shape index: {}]   ;;  %s830_s2 = inlined_call_operand.vmem [shape: f32[2], index: 2, kind: input, shape index: {}]   ;;  %s831_s3 = inlined_call_operand.vmem [shape: f32[32,64], index: 3, kind: output, shape index: {}]  }
   0x1   :  { %9 = vsyncpa [#allocation5], 0  ;;  %s637_s12 = smov 0  }
   0x2 LB: > { %s482_s13 = sadd.s32 4294967295, %s601_s12   ;;  %p484_p0 = scmp.ge.s32.totalorder %s601_s12, 1  ;;  %s601_s12 = sphi %s637_s12, %s15_s12  }
   0x3   : > { %p114_p1 = scmp.lt.s32.totalorder %s601_s12, 3  ;;  %s127_s16 = sshll.u32 %s829_s1, 4  ;;  %s128_s16 = int_to_ptr.vmem [resolvable:$true] %s127_s16 }
   0x4   : > { %p654_p3 = scmp.eq.s32.totalorder %s482_s13, 0  ;;  %s138_s21 = sshll.u32 %s830_s2, 4  ;;  %s139_s21 = int_to_ptr.vmem [resolvable:$true] %s138_s21 }
   0x5   : > { %p648_p2 = pnand %p484_p0, %p114_p1  ;;  %s553_s23 = scalar_lea.vmem %s128_s16, 32 }
   0x6   : > { %s836_s18 = scalar_select %p654_p3, 1, 0 }
   0x7   : > { %s835_s17 = scalar_select %p648_p2, 1, 0 }
   0x8   : > { %p514_p4 = pneg %p648_p2  ;;  %p554_p6 = scmp.ne.s32.totalorder %s128_s16, %s553_s23 }
   0x9   : > { %p561_p10 = scmp.lt.s32.totalorder %s128_s16, %s128_s16  ;;  %p562_p11 = scmp.lt.s32.totalorder %s553_s23, %s553_s23 }
   0xa   : > { %p665_p5 = pnand %p654_p3, %p514_p4 }
   0xb   : > { %p563_p12 = por %p562_p11, %p561_p10 }
   0xc   : > { %p555_p7 = pneg %p665_p5 }
   0xe   : > { %p556_p8 = pnand %p555_p7, %p554_p6 }
  0x10   : > { %p557_p9 = pneg %p556_p8 }
  0x12   : > { %p564_p13 = pnand %p563_p12, %p557_p9 }
  0x14   : > { %567 = shalt.err (!%p564_p13)
}
  0x15   : > { %s607_s24 = smov [#allocation2]   ;;  %s568_s25 = scalar_lea.vmem %s139_s21, 16 }
  0x16   : > { %517 = dma.vmem_to_smem (!%p665_p5), %s128_s16, 32, %s607_s24, [#allocation3]  }
  0x17   : > { %p569_p0 = scmp.ne.s32.totalorder %s139_s21, %s568_s25  ;;  %p576_p3 = scmp.lt.s32.totalorder %s139_s21, %s139_s21 }
  0x18   : > { %p577_p2 = scmp.lt.s32.totalorder %s568_s25, %s568_s25 }
  0x19   : > { %p571_p1 = pnand %p569_p0, %p555_p7 }
  0x1a   : > { %p578_p6 = por %p577_p2, %p576_p3 }
  0x1b   : > { %p572_p4 = pneg %p571_p1 }
  0x1d   : > { %p579_p8 = pnand %p578_p6, %p572_p4 }
  0x1f   : > { %582 = shalt.err (!%p579_p8)
}
  0x20   : > { %s608_s26 = smov [#allocation4]   ;;  %p838_p9 = scmp.ne.s32.totalorder %s835_s17, 0 }
  0x21   : > { %520 = dma.vmem_to_smem (!%p665_p5), %s139_s21, 16, %s608_s26, [#allocation5]  }
  0x22   : > { %160 = sbr.rel (%p838_p9) target bundleno = 899 (0x383), region = 32  ;;  %p839_p10 = scmp.ne.s32.totalorder (!%p838_p9), %s836_s18, 0 }
  0x29   : > { %592 = dma.done.wait (%p839_p10), [#allocation3], 32  }
  0x2a   : > { %594 = vsyncadd (%p839_p10), [#allocation3], 4294967264 }
  0x2b   : > { %596 = dma.done.wait (%p839_p10), [#allocation5], 16  }
  0x2c   : > { %598 = vsyncadd (%p839_p10), [#allocation5], 4294967280 }
  0x2d   : > { %170 = sfence }
  0x2e   : > { %s491_s27 = sshll.u32 %s482_s13, 1  ;;  %s687_s28 = sld [smem:[#allocation2]]  ;;  %v211_v0 = vlaneseq }
  0x2f   : > { %p190_p2 = scmp.lt.s32.totalorder %s491_s27, 3  ;;  %s689_s29 = sld [smem:[#allocation2 + $0x1]] }
  0x30   : > { %s691_s30 = sld [smem:[#allocation2 + $0x2]]  ;;  %s693_s4 = sld [smem:[#allocation2 + $0x3]]  ;;  %v212_v1 = vand.u32 127, %v211_v0 }
  0x31   : > { %s861_s27 = smov (!%p190_p2, %s491_s27), 3  ;;  %s695_s5 = sld [smem:[#allocation2 + $0x80]] }
  0x32   : > { %s697_s6 = sld [smem:[#allocation2 + $0x81]]  ;;  %v217_v2 = vand.u32 3, %v212_v1  ;;  %v230_v3 = vand.u32 7, %v212_v1  ;;  %s492_s7 = sshll.u32 %s861_s27, 3  ;;  %v245_v4 = vand.u32 15, %v212_v1  ;;  %v260_v5 = vand.u32 31, %v212_v1 }
  0x33   : > { %s699_s8 = sld [smem:[#allocation2 + $0x82]]  ;;  %v275_v6 = vand.u32 63, %v212_v1  ;;  %s704_s11 = scalar_lea.vmem %s828_s0, %s492_s7  ;;  %vm298_vm3 = vcmp.ge.s32.totalorder %v212_v1, 32  ;;  %vm299_vm13 = vcmp.lt.s32.totalorder %v212_v1, 64 }
  0x34   : > { %s709_s15 = scalar_lea.vmem %s831_s3, %s492_s7  ;;  %vm711_vm0 = vcmp.eq.s32.totalorder %v217_v2, 0  ;;  %vm715_vm1 = vcmp.ge.s32.totalorder %v230_v3, 2  ;;  %vm719_vm2 = vcmp.lt.s32.totalorder %v230_v3, 4  ;;  %s723_s16 = sld [smem:[#allocation2 + $0x83]]  ;;  %vm731_vm5 = vcmp.ge.s32.totalorder %v245_v4, 4  ;;  %vm770_vm15 = vmand %vm298_vm3, %vm299_vm13 }
  0x35   : > { %s725_s17 = sld [smem:[#allocation4]]  ;;  %vm240_vm4 = vmand %vm715_vm1, %vm719_vm2  ;;  %vm735_vm6 = vcmp.lt.s32.totalorder %v245_v4, 8  ;;  %s739_s18 = sld [smem:[#allocation4 + $0x1]]  ;;  %vm745_vm8 = vcmp.ge.s32.totalorder %v260_v5, 8  ;;  %vm749_vm9 = vcmp.lt.s32.totalorder %v260_v5, 16  ;;  %vm753_vm10 = vcmp.ge.s32.totalorder %v275_v6, 16 }
  0x36   : > { %vm255_vm7 = vmand %vm731_vm5, %vm735_vm6  ;;  %vm757_vm11 = vcmp.lt.s32.totalorder %v275_v6, 32  ;;  %s774_s19 = smov 0  }
  0x37   : > { %vm270_vm12 = vmand %vm745_vm8, %vm749_vm9 }
  0x38   : > { %vm285_vm14 = vmand %vm753_vm10, %vm757_vm11 }
  0x39 LB: >> { %s503_s20 = sshll.u32 %s605_s19, 3  ;;  %s609_s22 = smov 127   ;;  %v310_v18 = vstv %s687_s28  ;;  %v314_v19 = vstv %s695_s5  ;;  %v322_v24 = vstv %s689_s29  ;;  %v325_v25 = vstv %s697_s6  ;;  %s605_s19 = sphi %s774_s19, %s306_s19  }
  0x3a   : >> { %s308_s21 = scalar_lea.vmem %s704_s11, %s503_s20  ;;  %s610_s23 = smov 125   ;;  %v334_v31 = vstv %s699_s8  ;;  %v343_v32 = vstv %s723_s16  ;;  %v331_v41 = vstv %s691_s30  ;;  %v340_v43 = vstv %s693_s4 }
  0x3b   : >> { %v309_v17 = vld [vmem:[%s308_s21] sm:$0xff]  ;;  %s611_s24 = smov 126   ;;  %v312_v21 = vstv %s725_s17  ;;  %v316_v23 = vstv %s739_s18  ;;  %s612_s25 = smov 1   ;;  %vm393_vm3 = vcmask 523264  }
  0x3c   : >> { %319 = vrot.lane.b32.xlu0 %v309_v17, %s609_s22  ;;  %337 = vrot.lane.b32.xlu1 %v309_v17, %s610_s23  ;;  %v311_v20 = vmul.f32 %v310_v18, %v309_v17  ;;  %v315_v22 = vmul.f32 %v314_v19, %v309_v17  ;;  %s613_s26 = smov 124   ;;  %s614_s27 = smov 120  }
  0x3d   : >> { %s615_s7 = smov 112   ;;  %s616_s9 = smov 96  }
  0x3e   : >> { %v313_v26 = vadd.f32 %v312_v21, %v311_v20  ;;  %v317_v28 = vadd.f32 %v316_v23, %v315_v22  ;;  %s392_s10 = scalar_lea.vmem %s709_s15, %s503_s20  ;;  %s306_s19 = sadd.s32 1, %s605_s19  }
  0x3f   : >> { %p303_p3 = scmp.ge.s32.totalorder %s306_s19, 2  }
  0x40   : >> { %328 = vrot.lane.b32.xlu0 %v309_v17, %s611_s24 }
  0xae   : >> { %v320_v27 = vpop.permute.xlu0 %319  ;;  %v338_v33 = vpop.permute.xlu1 %337 }
  0xaf   : >> { %v323_v29 = vmul.f32 %v322_v24, %v320_v27  ;;  %v326_v30 = vmul.f32 %v325_v25, %v320_v27  ;;  %v344_v38 = vmul.f32 %v343_v32, %v338_v33  ;;  %v341_v45 = vmul.f32 %v340_v43, %v338_v33 }
  0xb1   : >> { %v324_v34 = vadd.f32 %v323_v29, %v313_v26  ;;  %v327_v36 = vadd.f32 %v326_v30, %v317_v28 }
  0xb2   : >> { %v329_v35 = vpop.permute.xlu0 %328 }
  0xb3   : >> { %v335_v37 = vmul.f32 %v334_v31, %v329_v35  ;;  %v332_v42 = vmul.f32 %v331_v41, %v329_v35 }
  0xb5   : >> { %v336_v39 = vadd.f32 %v335_v37, %v327_v36  ;;  %v333_v44 = vadd.f32 %v332_v42, %v324_v34 }
  0xb7   : >> { %v345_v40 = vadd.f32 %v344_v38, %v336_v39  ;;  %v342_v46 = vadd.f32 %v341_v45, %v333_v44 }
  0xb9   : >> { %347 = vrot.lane.b32.xlu1 %v345_v40, %s612_s25 }
 0x12b   : >> { %v348_v47 = vpop.permute.xlu1 %347 }
 0x12c   : >> { %v352_v48 = vsel %vm711_vm0, %v342_v46, %v348_v47 }
 0x12d   : >> { %354 = vrot.lane.b32.xlu0 %v352_v48, %s611_s24 }
 0x19f   : >> { %v355_v49 = vpop.permute.xlu0 %354 }
 0x1a0   : >> { %v359_v50 = vsel %vm240_vm4, %v355_v49, %v352_v48 }
 0x1a1   : >> { %361 = vrot.lane.b32.xlu1 %v359_v50, %s613_s26 }
 0x213   : >> { %v362_v51 = vpop.permute.xlu1 %361 }
 0x214   : >> { %v366_v52 = vsel %vm255_vm7, %v362_v51, %v359_v50 }
 0x215   : >> { %368 = vrot.lane.b32.xlu0 %v366_v52, %s614_s27 }
 0x287   : >> { %v369_v53 = vpop.permute.xlu0 %368 }
 0x288   : >> { %v373_v54 = vsel %vm270_vm12, %v369_v53, %v366_v52 }
 0x289   : >> { %375 = vrot.lane.b32.xlu1 %v373_v54, %s615_s7 }
 0x2fb   : >> { %v376_v55 = vpop.permute.xlu1 %375 }
 0x2fc   : >> { %v380_v56 = vsel %vm285_vm14, %v376_v55, %v373_v54 }
 0x2fd   : >> { %382 = vrot.lane.b32.xlu0 %v380_v56, %s616_s9 }
 0x36f   : >> { %v383_v57 = vpop.permute.xlu0 %382 }
 0x370   : >> { %v387_v58 = vsel %vm770_vm15, %v383_v57, %v380_v56 }
 0x371   : >> { %v388_v59 = vmul.f32 0.5, %v387_v58 }
 0x373   : >> { %551 = vtanh.f32 %v388_v59 }
 0x37c   : > { %305 = sbr.rel (!%p303_p3) target bundleno = 57 (0x39), region = 80 }
 0x37d   : >> { %v552_v60 = vpop.eup %551 }
 0x37e   : >> { %v390_v61 = vmul.f32 0.5, %v552_v60 }
 0x380   : >> { %v391_v62 = vadd.f32 0.5, %v390_v61 }
 0x382   : >> { %394 = vst.msk [vmem:[%s392_s10] sm:$0xff] %vm393_vm3, %v391_v62 }
 0x383 PF: > { %s15_s12 = sadd.s32 1, %s601_s12  }
 0x384   : > { %p12_p5 = scmp.ge.s32.totalorder %s15_s12, 4  }
 0x386   :  { %14 = sbr.rel (!%p12_p5) target bundleno = 2 (0x2), region = 91 }
 0x38d   :  { %417 = vsyncpa [#allocation3], 1 }
 0x38e   :  { %419 = vsyncpa [#allocation3 + $0x1], 1 }
 0x38f   :  { %420 = vsyncpa [#allocation5], 1 }

</bundles_post_ra>
